<compile_context>
chip_gen: v5e
topology: v5e:2x2
jax: 0.10.0
libtpu: 0.0.40
codegen_flags: <defaults>
</compile_context>

<pallas_src>
import functools

import jax
import jax.numpy as jnp
from jax.experimental import pallas as pl
from jax.experimental.pallas import tpu as pltpu

EPS = 1e-5
LANE = 128
SUBLANE = 8
SMALL_TOTAL_BYTES = 256 * 1024  # below this a single fused grid step is cheapest


# ----------------------------------------------------------------------------- 
# VMEM budgeting (per-chip).
# -----------------------------------------------------------------------------
def _vmem_budget():
    """Return (scoped vmem_limit_bytes, per-grid-step resident byte budget)."""
    cap = 64 * 1024 * 1024  # conservative default = v7x per-TC physical VMEM
    try:
        info = pltpu.get_tpu_info()
        cap = int(getattr(info, "vmem_capacity_bytes", cap) or cap)
    except Exception:
        pass
    # ~3/4 of physical, capped at 96 MiB (v5e/v6e) -> 48 MiB on v7x; the rest is
    # headroom for compiler-managed f32 temporaries.
    limit = min((cap * 3) // 4, 96 * 1024 * 1024)
    limit = max(limit, 32 * 1024 * 1024)
    budget = (limit * 3) // 5
    return limit, budget


def _pick_tile_d(d_model, max_tile_d):
    """Feature tile: lane-multiple divisor of D (or full D when D % 128 != 0).

    The VMEM budget itself is enforced by the caller (which falls back to the
    row-blocked two-pass path when even the minimal strip does not fit), so no
    silent budget-ignoring fallback exists here.
    """
    if d_model % LANE != 0:
        return d_model  # full-D block: lane-masked stores, but no pad/slice copies
    m = d_model // LANE
    cap = max(1, max_tile_d // LANE)
    for k in range(min(m, cap), 0, -1):
        if m % k == 0:
            return k * LANE
    return LANE


# -----------------------------------------------------------------------------
# Kernels.
# -----------------------------------------------------------------------------
def _fused_kernel(x_ref, gamma_ref, beta_ref, o_ref):
    """Single-pass BN over a whole (N, TILE_D) feature strip."""
    xf = x_ref[...].astype(jnp.float32)
    inv_n = 1.0 / xf.shape[0]
    mean = jnp.sum(xf, axis=0, keepdims=True) * inv_n
    centered = xf - mean
    var = jnp.sum(centered * centered, axis=0, keepdims=True) * inv_n
    inv_std = jax.lax.rsqrt(var + EPS)
    scale = gamma_ref[...].astype(jnp.float32) * inv_std
    # Reuse `centered` (no shift vector / second read of x): y = centered*scale + beta.
    y = centered * scale + beta_ref[...].astype(jnp.float32)
    o_ref[...] = y.astype(o_ref.dtype)


def _stats_kernel(x_ref, sum_ref, sumsq_ref, *, n_rows, tile_n):
    """Pass 1: accumulate per-feature sum / sumsq over row blocks (f32)."""
    r = pl.program_id(1)

    @pl.when(r == 0)
    def _():
        sum_ref[...] = jnp.zeros_like(sum_ref)
        sumsq_ref[...] = jnp.zeros_like(sumsq_ref)

    xf = x_ref[...].astype(jnp.float32)
    # Mask rows past the true N in the (possibly partial) last row block.
    row_ids = jax.lax.broadcasted_iota(jnp.int32, xf.shape, 0)
    valid = row_ids < (n_rows - r * tile_n)
    xf = jnp.where(valid, xf, 0.0)

    sum_ref[...] += jnp.sum(xf, axis=0, keepdims=True)
    sumsq_ref[...] += jnp.sum(xf * xf, axis=0, keepdims=True)


def _apply_kernel(x_ref, scale_ref, shift_ref, o_ref):
    """Pass 2: y = x * scale + shift (f32 FMA, cast only at the store)."""
    xf = x_ref[...].astype(jnp.float32)
    y = xf * scale_ref[...] + shift_ref[...]
    o_ref[...] = y.astype(o_ref.dtype)


# -----------------------------------------------------------------------------
# Drivers.
# -----------------------------------------------------------------------------
def _single_pass(flat, gamma2d, beta2d, n, d, tile_d, limit):
    nd = d // tile_d
    return pl.pallas_call(
        _fused_kernel,
        out_shape=jax.ShapeDtypeStruct((n, d), flat.dtype),
        grid=(nd,),
        in_specs=[
            pl.BlockSpec((n, tile_d), lambda j: (0, j)),
            pl.BlockSpec((1, tile_d), lambda j: (0, j)),
            pl.BlockSpec((1, tile_d), lambda j: (0, j)),
        ],
        out_specs=pl.BlockSpec((n, tile_d), lambda j: (0, j)),
        compiler_params=pltpu.CompilerParams(
            dimension_semantics=("parallel",),
            vmem_limit_bytes=limit,
        ),
    )(flat, gamma2d, beta2d)


def _two_pass(flat, gamma2d, beta2d, n, d, itemsize, limit, budget):
    # Feature tile (kept large; row blocking provides parallelism/pipelining).
    max_tile_d = max(LANE, min(2048, budget // (256 * (4 * itemsize + 12))))
    tile_d = _pick_tile_d(d, max_tile_d)
    nd = pl.cdiv(d, tile_d)

    # Row tile: multiple of 8, fits the per-step budget, and >=2 row blocks
    # whenever N allows (pipelining + both TensorCores on v7x).
    per_row = tile_d * (4 * itemsize + 12)
    tile_n = max(SUBLANE, min(budget // per_row, 2048))
    tile_n = (tile_n // SUBLANE) * SUBLANE
    if n > SUBLANE:
        half = -(-((n + 1) // 2) // SUBLANE) * SUBLANE  # ceil8(ceil(n/2))
        tile_n = min(tile_n, half)
    tile_n = max(SUBLANE, tile_n)
    nr = pl.cdiv(n, tile_n)

    # --- Pass 1: per-feature sum / sumsq (reduction axis last, "arbitrary"). ---
    sums, sumsq = pl.pallas_call(
        functools.partial(_stats_kernel, n_rows=n, tile_n=tile_n),
        out_shape=(
            jax.ShapeDtypeStruct((1, d), jnp.float32),
            jax.ShapeDtypeStruct((1, d), jnp.float32),
        ),
        grid=(nd, nr),
        in_specs=[pl.BlockSpec((tile_n, tile_d), lambda j, r: (r, j))],
        out_specs=(
            pl.BlockSpec((1, tile_d), lambda j, r: (0, j)),
            pl.BlockSpec((1, tile_d), lambda j, r: (0, j)),
        ),
        compiler_params=pltpu.CompilerParams(
            dimension_semantics=("parallel", "arbitrary"),
            vmem_limit_bytes=limit,
        ),
    )(flat)

    # Tiny (1, D) folding of stats into fused scale/shift (negligible HBM).
    inv_n = 1.0 / n
    mean = sums * inv_n
    var = jnp.maximum(sumsq * inv_n - mean * mean, 0.0)  # biased variance
    scale = gamma2d.astype(jnp.float32) * jax.lax.rsqrt(var + EPS)
    shift = beta2d.astype(jnp.float32) - mean * scale

    # --- Pass 2: fused apply, fully parallel (row, feature) grid. ---
    return pl.pallas_call(
        _apply_kernel,
        out_shape=jax.ShapeDtypeStruct((n, d), flat.dtype),
        grid=(nr, nd),
        in_specs=[
            pl.BlockSpec((tile_n, tile_d), lambda r, j: (r, j)),
            pl.BlockSpec((1, tile_d), lambda r, j: (0, j)),
            pl.BlockSpec((1, tile_d), lambda r, j: (0, j)),
        ],
        out_specs=pl.BlockSpec((tile_n, tile_d), lambda r, j: (r, j)),
        compiler_params=pltpu.CompilerParams(
            dimension_semantics=("parallel", "parallel"),
            vmem_limit_bytes=limit,
        ),
    )(flat, scale, shift)


def seq_bn(x, gamma, beta, *, force_two_pass=False):
    """SeqBN forward: training-mode BatchNorm1d over the flattened rows of x[..., D]."""
    d = x.shape[-1]
    orig_shape = x.shape
    flat = x.reshape(-1, d)
    n = flat.shape[0]
    itemsize = jnp.dtype(x.dtype).itemsize
    gamma2d = gamma.reshape(1, d)
    beta2d = beta.reshape(1, d)

    limit, budget = _vmem_budget()

    # Decide single-pass (whole-N feature strips) vs row-blocked two-pass.
    per_col = n * (4 * itemsize + 12)  # in/out double-buffered + f32 temps, per column
    max_cols = budget // max(per_col, 1)
    use_single = False
    tile_d = None
    if not force_two_pass and max_cols >= min(d, LANE):
        # Prefer >=2 feature tiles when D allows it (pipelining + megacore).
        cap = max_cols if (d % LANE != 0 or d < 2 * LANE) else min(max_cols, d // 2)
        cand = _pick_tile_d(d, cap)
        if cand <= max_cols:
            tile_d = cand
            nd = d // tile_d
            use_single = nd >= 2 or (n * d * itemsize) <= SMALL_TOTAL_BYTES

    if use_single:
        out = _single_pass(flat, gamma2d, beta2d, n, d, tile_d, limit)
    else:
        out = _two_pass(flat, gamma2d, beta2d, n, d, itemsize, limit, budget)
    return out.reshape(orig_shape)


# -----------------------------------------------------------------------------
# Reference + self-test.
# -----------------------------------------------------------------------------
def _reference(x, gamma, beta):
    d = x.shape[-1]
    fx = x.reshape(-1, d).astype(jnp.float32)
    mean = jnp.mean(fx, axis=0, keepdims=True)
    var = jnp.mean((fx - mean) ** 2, axis=0, keepdims=True)
    y = (fx - mean) / jnp.sqrt(var + EPS) * gamma.reshape(1, d) + beta.reshape(1, d)
    return y.reshape(x.shape).astype(x.dtype)


if __name__ == "__main__":
    key = jax.random.PRNGKey(0)
    k1, k2, k3 = jax.random.split(key, 3)

    # Case 1: module-implied small shape (seq=8, batch=2, d_model=32).
    # D % 128 != 0 -> full-D un-padded block (no pad/slice HBM copies); fused pass.
    x1 = jax.random.normal(k1, (8, 2, 32), dtype=jnp.float32)
    g1 = 1.0 + 0.01 * jnp.arange(32, dtype=jnp.float32)
    b1 = 0.01 * jnp.arange(32, dtype=jnp.float32)
    o1 = jax.block_until_ready(seq_bn(x1, g1, b1))
    r1 = _reference(x1, g1, b1)
    assert o1.shape == x1.shape
    assert jnp.allclose(o1, r1, atol=1e-4, rtol=1e-4), "mismatch vs reference (case 1)"

    # Case 2: row-blocked two-pass path (stats + apply), including a partial
    # last row block (N=65 not a multiple of tile_n) exercising the row mask.
    x2 = jax.random.normal(k2, (13, 5, 256), dtype=jnp.float32)
    g2 = jnp.linspace(0.5, 1.5, 256, dtype=jnp.float32)
    b2 = jnp.linspace(-0.2, 0.2, 256, dtype=jnp.float32)
    o2 = jax.block_until_ready(seq_bn(x2, g2, b2, force_two_pass=True))
    r2 = _reference(x2, g2, b2)
    assert o2.shape == x2.shape
    assert jnp.allclose(o2, r2, atol=1e-4, rtol=1e-4), "mismatch vs reference (case 2)"

    # Case 3: default path with D=256 -> two feature tiles, parallel grid.
    x3 = jax.random.normal(k3, (4, 3, 256), dtype=jnp.float32)
    g3 = jnp.ones((256,), jnp.float32)
    b3 = jnp.zeros((256,), jnp.float32)
    o3 = jax.block_until_ready(seq_bn(x3, g3, b3))
    r3 = _reference(x3, g3, b3)
    assert o3.shape == x3.shape
    assert jnp.allclose(o3, r3, atol=1e-4, rtol=1e-4), "mismatch vs reference (case 3)"

    print("KERNEL_OK")
</pallas_src>

<mosaic_0001>
module attributes {stable_mosaic.version = 11 : i64} {
  func.func @_fused_kernel(%arg0: i32, %arg1: memref<16x32xf32, #tpu.memory_space<vmem>>, %arg2: memref<1x32xf32, #tpu.memory_space<vmem>>, %arg3: memref<1x32xf32, #tpu.memory_space<vmem>>, %arg4: memref<16x32xf32, #tpu.memory_space<vmem>>) attributes {dimension_semantics = [#tpu.dimension_semantics<parallel>], iteration_bounds = array<i64: 1>, scalar_prefetch = 0 : i64, scratch_operands = 0 : i64, tpu.core_type = #tpu.core_type<tc>, window_params = [{transform_indices = @transform_0, window_bounds = array<i64: 16, 32>}, {transform_indices = @transform_1, window_bounds = array<i64: 1, 32>}, {transform_indices = @transform_2, window_bounds = array<i64: 1, 32>}, {transform_indices = @transform_3, window_bounds = array<i64: 16, 32>}]} {
    %c0 = arith.constant 0 : index
    %c0_0 = arith.constant 0 : index
    %0 = vector.load %arg1[%c0, %c0_0] : memref<16x32xf32, #tpu.memory_space<vmem>>, vector<16x32xf32>
    %cst = arith.constant dense<0.000000e+00> : vector<32xf32>
    %1 = vector.multi_reduction <add>, %0, %cst [0] : vector<16x32xf32> to vector<32xf32>
    %2 = vector.shape_cast %1 : vector<32xf32> to vector<1x32xf32>
    %cst_1 = arith.constant 6.250000e-02 : f32
    %3 = vector.broadcast %cst_1 : f32 to vector<1x32xf32>
    %4 = arith.mulf %2, %3 : vector<1x32xf32>
    %5 = vector.broadcast %4 : vector<1x32xf32> to vector<16x32xf32>
    %6 = arith.subf %0, %5 : vector<16x32xf32>
    %7 = arith.mulf %6, %6 : vector<16x32xf32>
    %cst_2 = arith.constant dense<0.000000e+00> : vector<32xf32>
    %8 = vector.multi_reduction <add>, %7, %cst_2 [0] : vector<16x32xf32> to vector<32xf32>
    %9 = vector.shape_cast %8 : vector<32xf32> to vector<1x32xf32>
    %cst_3 = arith.constant 6.250000e-02 : f32
    %10 = vector.broadcast %cst_3 : f32 to vector<1x32xf32>
    %11 = arith.mulf %9, %10 : vector<1x32xf32>
    %cst_4 = arith.constant 9.99999974E-6 : f32
    %12 = vector.broadcast %cst_4 : f32 to vector<1x32xf32>
    %13 = arith.addf %11, %12 : vector<1x32xf32>
    %14 = math.rsqrt %13 : vector<1x32xf32>
    %c0_5 = arith.constant 0 : index
    %c0_6 = arith.constant 0 : index
    %15 = vector.load %arg2[%c0_5, %c0_6] : memref<1x32xf32, #tpu.memory_space<vmem>>, vector<1x32xf32>
    %16 = arith.mulf %15, %14 : vector<1x32xf32>
    %17 = vector.broadcast %16 : vector<1x32xf32> to vector<16x32xf32>
    %18 = arith.mulf %6, %17 : vector<16x32xf32>
    %c0_7 = arith.constant 0 : index
    %c0_8 = arith.constant 0 : index
    %19 = vector.load %arg3[%c0_7, %c0_8] : memref<1x32xf32, #tpu.memory_space<vmem>>, vector<1x32xf32>
    %20 = vector.broadcast %19 : vector<1x32xf32> to vector<16x32xf32>
    %21 = arith.addf %18, %20 : vector<16x32xf32>
    %c0_9 = arith.constant 0 : index
    %c0_10 = arith.constant 0 : index
    %22 = vector.load %arg4[%c0_9, %c0_10] : memref<16x32xf32, #tpu.memory_space<vmem>>, vector<16x32xf32>
    tpu.vector_store %arg4[%c0_9, %c0_10], %21 {strides = array<i32>} : memref<16x32xf32, #tpu.memory_space<vmem>>, vector<16x32xf32>,
    return
  }
  func.func @transform_0(%arg0: i32) -> (i32, i32) {
    %c0_i32 = arith.constant 0 : i32
    %c0_i32_0 = arith.constant 0 : i32
    return %c0_i32, %arg0 : i32, i32
  }
  func.func @transform_1(%arg0: i32) -> (i32, i32) {
    %c0_i32 = arith.constant 0 : i32
    %c0_i32_0 = arith.constant 0 : i32
    return %c0_i32, %arg0 : i32, i32
  }
  func.func @transform_2(%arg0: i32) -> (i32, i32) {
    %c0_i32 = arith.constant 0 : i32
    %c0_i32_0 = arith.constant 0 : i32
    return %c0_i32, %arg0 : i32, i32
  }
  func.func @transform_3(%arg0: i32) -> (i32, i32) {
    %c0_i32 = arith.constant 0 : i32
    %c0_i32_0 = arith.constant 0 : i32
    return %c0_i32, %arg0 : i32, i32
  }
}

</mosaic_0001>

<bundles_post_ra>
// kernel: tpu_custom_call.1
= control target key start
LH: loop header
LB: loop body
LE: loop exit
PB: predicated region body
PF: predicated region fallthrough
CT: control target
= control target key end

     0   :  { %8 = vsyncpa [#allocation3], 0  ;;  %s253_s0 = inlined_call_operand.hbm [shape: f32[16,32], index: 0, kind: input, shape index: {}]   ;;  %s254_s1 = inlined_call_operand.hbm [shape: f32[1,32], index: 1, kind: input, shape index: {}]   ;;  %s255_s2 = inlined_call_operand.vmem [shape: f32[1,32], index: 2, kind: input, shape index: {}]   ;;  %s256_s3 = inlined_call_operand.hbm [shape: f32[16,32], index: 3, kind: output, shape index: {}]  }
   0x1   :  { %9 = vsyncpa [#allocation6], 0 }
   0x2   :  { %10 = vsyncpa [#allocation4], 0  ;;  %s15_s14 = sshll.u32 %s253_s0, 4  ;;  %s204_s15 = smov [#allocation2]   ;;  %s16_s14 = int_to_ptr.hbm [resolvable:$true] %s15_s14 }
   0x3   :  { %s17_s16 = sshll.u32 %s204_s15, 4  ;;  %s29_s19 = sshll.u32 %s254_s1, 4  ;;  %s18_s16 = int_to_ptr.vmem [resolvable:$true] %s17_s16  ;;  %s30_s19 = int_to_ptr.hbm [resolvable:$true] %s29_s19 }
   0x4   :  { %s205_s20 = smov 128   ;;  %s206_s21 = smov 8  }
   0x5   :  { %23 = dma.hbm_to_vmem [thread:$0]  %s16_s14, 256, %s18_s16, [#allocation3], %s205_s20, %s205_s20, %s206_s21  }
   0x6   :  { %s207_s22 = smov [#allocation5]  }
   0x7   :  { %s31_s23 = sshll.u32 %s207_s22, 4  ;;  %s32_s23 = int_to_ptr.vmem [resolvable:$true] %s31_s23 }
   0x8   :  { %34 = dma.hbm_to_vmem [thread:$0]  %s30_s19, 16, %s32_s23, [#allocation6]  }
   0x9   :  { %198 = dma.done.wait [#allocation3], 256  }
   0xa   :  { %199 = vsyncadd [#allocation3], 4294967040 }
   0xb   :  { %200 = dma.done.wait [#allocation6], 16  }
   0xc   :  { %201 = vsyncadd [#allocation6], 4294967280  ;;  %vm47_vm0 = vcmask 261120   ;;  %v45_v0 = vld [vmem:[#allocation2] sm:$0xff]  ;;  %v46_v1 = vld [vmem:[#allocation2 + $0x8] sm:$0xff]  ;;  %s208_s24 = smov [#allocation7]  }
   0xd   :  { %v48_v2 = vsel %vm47_vm0, %v45_v0, 0.0  ;;  %v49_v3 = vsel %vm47_vm0, %v46_v1, 0.0  ;;  %v83_v33 = vld [vmem:[#allocation5] sm:$0x1]  ;;  %v123_v37 = vld [vmem:[%s255_s2] ss:$0 sm:$0xff] }
   0xe   :  { %v50_v4 = vadd.f32 %v49_v3, %v48_v2  ;;  %s102_s25 = sshll.u32 %s208_s24, 4  ;;  %s104_s28 = sshll.u32 %s256_s3, 4  ;;  %s103_s25 = int_to_ptr.vmem [resolvable:$true] %s102_s25  ;;  %s105_s28 = int_to_ptr.hbm [resolvable:$true] %s104_s28 }
  0x10   :  { %v51_v5 = vrot.slane %v50_v4, 4 }
  0x12   :  { %v52_v6 = vadd.f32 %v51_v5, %v50_v4 }
  0x14   :  { %v53_v7 = vrot.slane %v52_v6, 2 }
  0x16   :  { %v54_v8 = vadd.f32 %v53_v7, %v52_v6 }
  0x18   :  { %v55_v9 = vrot.slane %v54_v8, 1 }
  0x1a   :  { %v56_v10 = vadd.f32 %v55_v9, %v54_v8 }
  0x1c   :  { %v57_v11 = vmul.f32 0.0625, %v56_v10 }
  0x1e   :  { %v58_v12 = vsub.f32 %v45_v0, %v57_v11  ;;  %v59_v13 = vsub.f32 %v46_v1, %v57_v11 }
  0x20   :  { %v60_v14 = vmul.f32 %v58_v12, %v58_v12  ;;  %v61_v15 = vmul.f32 %v59_v13, %v59_v13 }
  0x22   :  { %v62_v16 = vsel %vm47_vm0, %v60_v14, 0.0  ;;  %v63_v17 = vsel %vm47_vm0, %v61_v15, 0.0 }
  0x23   :  { %v64_v18 = vadd.f32 %v63_v17, %v62_v16 }
  0x25   :  { %v65_v19 = vrot.slane %v64_v18, 4 }
  0x27   :  { %v66_v20 = vadd.f32 %v65_v19, %v64_v18 }
  0x29   :  { %v67_v21 = vrot.slane %v66_v20, 2 }
  0x2b   :  { %v68_v22 = vadd.f32 %v67_v21, %v66_v20 }
  0x2d   :  { %v69_v23 = vrot.slane %v68_v22, 1 }
  0x2f   :  { %v70_v24 = vadd.f32 %v69_v23, %v68_v22 }
  0x31   :  { %v71_v25 = vmul.f32 0.0625, %v70_v24 }
  0x33   :  { %v72_v26 = vadd.f32 1e-05, %v71_v25 }
  0x35   :  { %124 = vrsqrt.f32 %v72_v26  ;;  %vm79_vm1 = vweird.f32 %v72_v26 }
  0x3b   :  { %v125_v27 = vpop.eup %124 }
  0x3c   :  { %v74_v28 = vmul.f32 %v125_v27, %v72_v26  ;;  %vm80_vm2 = vweird.f32 %v125_v27 }
  0x3d   :  { %vm81_vm3 = vmor %vm79_vm1, %vm80_vm2 }
  0x3e   :  { %v75_v29 = vmul.f32 %v125_v27, %v74_v28 }
  0x40   :  { %v76_v30 = vmul.f32 0.5, %v75_v29 }
  0x42   :  { %v77_v31 = vsub.f32 1.5, %v76_v30 }
  0x44   :  { %v78_v32 = vmul.f32 %v125_v27, %v77_v31 }
  0x46   :  { %v82_v34 = vsel %vm81_vm3, %v125_v27, %v78_v32 }
  0x47   :  { %v84_v35 = vmul.f32 %v83_v33, %v82_v34 }
  0x49   :  { %v86_v36 = vperm.slane %v84_v35, 0 }
  0x4b   :  { %v88_v38 = vmul.f32 %v86_v36, %v58_v12  ;;  %v89_v39 = vmul.f32 %v86_v36, %v59_v13 }
  0x4d   :  { %v94_v40 = vadd.f32 %v123_v37, %v88_v38  ;;  %v95_v41 = vadd.f32 %v123_v37, %v89_v39 }
  0x4f   :  { %96 = vst.msk [vmem:[#allocation7] sm:$0xff] %vm47_vm0, %v94_v40 }
  0x50   :  { %97 = vst.msk [vmem:[#allocation7 + $0x8] sm:$0xff] %vm47_vm0, %v95_v41 }
  0x51   :  { %110 = dma.vmem_to_hbm [thread:$0]  %s103_s25, 256, %s105_s28, [#allocation4], %s205_s20, %s205_s20, %s206_s21  }
  0x52   :  { %202 = dma.done.wait [#allocation4], 256  }
  0x53   :  { %203 = vsyncadd [#allocation4], 4294967040 }
  0x54   :  { %115 = vsyncpa [#allocation3], 1 }
  0x55   :  { %116 = vsyncpa [#allocation6], 1 }
  0x56   :  { %117 = vsyncpa [#allocation4], 1 }

</bundles_post_ra>
